<compile_context>
chip_gen: v7x
topology: tpu7x:2x2x1
jax: 0.10.0
libtpu: 0.0.40
codegen_flags: <defaults>
</compile_context>

<pallas_src>
import math

import jax
import jax.numpy as jnp
from jax.experimental import pallas as pl
from jax.experimental.pallas import tpu as pltpu

EPS = 1e-5
_MIB = 1024 * 1024


def _round_up(n: int, m: int) -> int:
    return ((n + m - 1) // m) * m


def _pad_to(a, shape):
    pads = [(0, t - s) for s, t in zip(a.shape, shape)]
    if all(p == (0, 0) for p in pads):
        return a
    return jnp.pad(a, pads)


def _physical_vmem_bytes() -> int:
    """Physical VMEM of the attached TPU; conservative v7x value if query unavailable."""
    try:
        info = pltpu.get_tpu_info()
        for attr in ("vmem_capacity_bytes", "vmem_size_bytes", "vmem_bytes"):
            v = getattr(info, attr, None)
            if v:
                return int(v)
    except Exception:
        pass
    return 64 * _MIB  # v7x (smallest current part) -- always a legal assumption


# --------------------------------------------------------------------------------------
# Kernels
# --------------------------------------------------------------------------------------
def _encoder_bn_kernel(x_ref, w1_ref, gamma_ref, beta_ref, h_ref, acc_ref):
    """K-tiled  h = x @ w1  accumulated in f32, then folded training-mode BatchNorm."""
    k = pl.program_id(0)

    @pl.when(k == 0)
    def _():
        acc_ref[...] = jnp.zeros_like(acc_ref)

    # Native-dtype operands on the MXU, f32 accumulation.
    acc_ref[...] += jnp.dot(x_ref[...], w1_ref[...],
                            preferred_element_type=jnp.float32)

    @pl.when(k == pl.num_programs(0) - 1)
    def _():
        h = acc_ref[...]
        mean = jnp.mean(h, axis=0, keepdims=True)                   # (1, emb)
        centered = h - mean
        var = jnp.mean(centered * centered, axis=0, keepdims=True)  # biased variance
        s = gamma_ref[...] * jax.lax.rsqrt(var + EPS)
        t = beta_ref[...] - mean * s
        h_ref[...] = (h * s + t).astype(h_ref.dtype)                # 2 VPU passes


def _decoder_kernel(h_ref, w2_ref, b2_ref, out_ref):
    """One output-column tile of  out = h_bn @ w2 + b2."""
    out = jnp.dot(h_ref[...], w2_ref[...], preferred_element_type=jnp.float32)
    out_ref[...] = (out + b2_ref[...]).astype(out_ref.dtype)


# --------------------------------------------------------------------------------------
# Wrapper
# --------------------------------------------------------------------------------------
def autoencoder_bn_forward(x, w1, b1, gamma, beta, w2, b2, *,
                           stream_dtype=None, tile_n=None, tile_k=None):
    """x: (B, d)  w1: (d, emb)  b1/gamma/beta: (1, emb)  w2: (emb, d)  b2: (1, d)

    `b1` is accepted for parameter parity with the PyTorch module but is unused:
    training-mode BatchNorm subtracts the per-batch mean, so the encoder bias cancels
    exactly.  (If eval-mode running stats are ever plumbed in, restore b1.)

    `stream_dtype=jnp.bfloat16` streams x / w1 / w2 in bf16 (halves HBM bytes, doubles
    MXU rate on v6e/v7x); accumulation stays f32.
    """
    del b1  # cancels exactly under per-batch BatchNorm
    out_dtype = x.dtype
    B, d = x.shape
    emb = w1.shape[1]

    if stream_dtype is not None:
        x = x.astype(stream_dtype)
        w1 = w1.astype(stream_dtype)
        w2 = w2.astype(stream_dtype)
    cdt = x.dtype
    isz = jnp.dtype(cdt).itemsize
    osz = jnp.dtype(out_dtype).itemsize

    # Pad feature dims to lane width (128): dense vregs, unmasked stores, full MXU columns.
    d_pad = _round_up(d, 128)
    emb_pad = _round_up(emb, 128)

    # In production these padded / cast params would be prepared once, outside the hot path.
    x_p = _pad_to(x, (B, d_pad))
    w1_p = _pad_to(w1, (d_pad, emb_pad))
    gamma_p = _pad_to(gamma.astype(jnp.float32), (1, emb_pad))   # zero-pad => s=0 on pad lanes
    beta_p = _pad_to(beta.astype(jnp.float32), (1, emb_pad))
    w2_p = _pad_to(w2, (emb_pad, d_pad))
    b2_p = _pad_to(b2.astype(jnp.float32), (1, d_pad))

    # Generation-aware scoped-VMEM budget: 48 MiB on v7x (64 MiB physical),
    # 96 MiB on v5e / v6e (128 MiB physical).
    budget = int(_physical_vmem_bytes() * 3 // 4)

    # ---------------- call 1: encoder matmul (K-tiled) + folded BatchNorm ----------------
    def enc_vmem(tk):
        return (2 * B * tk * isz              # x K-tile (double buffered)
                + 2 * tk * emb_pad * isz      # w1 K-tile (double buffered)
                + 2 * 2 * 8 * emb_pad * 4     # gamma / beta (sublane-padded)
                + 2 * B * emb_pad * isz       # h_bn output
                + B * emb_pad * 4             # f32 accumulator scratch
                + 2 * _MIB)                   # temporaries / headroom

    if tile_k is None:
        tile_k = next((t for t in (2048, 1024, 512, 256, 128)
                       if d_pad % t == 0 and enc_vmem(t) <= budget), 128)
    num_k = d_pad // tile_k

    h_bn = pl.pallas_call(
        _encoder_bn_kernel,
        out_shape=jax.ShapeDtypeStruct((B, emb_pad), cdt),
        grid=(num_k,),
        in_specs=[
            pl.BlockSpec((B, tile_k), lambda k: (0, k)),        # x K-tile
            pl.BlockSpec((tile_k, emb_pad), lambda k: (k, 0)),  # w1 K-tile
            pl.BlockSpec((1, emb_pad), lambda k: (0, 0)),       # gamma (resident)
            pl.BlockSpec((1, emb_pad), lambda k: (0, 0)),       # beta  (resident)
        ],
        out_specs=pl.BlockSpec((B, emb_pad), lambda k: (0, 0)),  # resident, written once
        scratch_shapes=[pltpu.VMEM((B, emb_pad), jnp.float32)],
        compiler_params=pltpu.CompilerParams(
            dimension_semantics=("arbitrary",),                  # K is a reduction axis
            vmem_limit_bytes=budget,
        ),
    )(x_p, w1_p, gamma_p, beta_p)

    # ---------------- call 2: decoder, output-column tiled ("parallel") ----------------
    def dec_vmem(tn):
        return (2 * B * emb_pad * isz         # resident h_bn (double buffered)
                + 2 * emb_pad * tn * isz      # w2 column tile
                + 2 * 8 * tn * 4              # b2 tile (sublane-padded)
                + 2 * B * tn * osz            # output tile
                + B * tn * 4                  # f32 matmul accumulator
                + 2 * _MIB)                   # temporaries / headroom

    if tile_n is None:
        cands = [t for t in (2048, 1024, 512, 256, 128) if d_pad % t == 0]
        # Guarantee >= 2 decoder tiles when d_pad >= 256 so both v7x TensorCores get work.
        tile_n = next((t for t in cands
                       if (d_pad // t >= 2 or d_pad == 128) and dec_vmem(t) <= budget), 128)
    num_tiles = d_pad // tile_n

    out_p = pl.pallas_call(
        _decoder_kernel,
        out_shape=jax.ShapeDtypeStruct((B, d_pad), out_dtype),
        grid=(num_tiles,),
        in_specs=[
            pl.BlockSpec((B, emb_pad), lambda j: (0, 0)),        # h_bn (resident)
            pl.BlockSpec((emb_pad, tile_n), lambda j: (0, j)),   # w2 column tile
            pl.BlockSpec((1, tile_n), lambda j: (0, j)),         # b2 tile
        ],
        out_specs=pl.BlockSpec((B, tile_n), lambda j: (0, j)),
        compiler_params=pltpu.CompilerParams(
            dimension_semantics=("parallel",),                   # megacore-shards tiles
            vmem_limit_bytes=budget,
        ),
    )(h_bn, w2_p, b2_p)

    return out_p[:, :d]


# --------------------------------------------------------------------------------------
# Reference + init (mirrors the PyTorch module)
# --------------------------------------------------------------------------------------
def init_params(key, d, emb_dim):
    """Deterministic init mirroring nn.Linear defaults (uniform +-1/sqrt(fan_in)).
    Weights stored transposed relative to PyTorch: (in_features, out_features)."""
    k1, k2, k3, k4 = jax.random.split(key, 4)
    bound1 = 1.0 / math.sqrt(d)
    w1 = jax.random.uniform(k1, (d, emb_dim), jnp.float32, -bound1, bound1)
    b1 = jax.random.uniform(k2, (1, emb_dim), jnp.float32, -bound1, bound1)
    bound2 = 1.0 / math.sqrt(emb_dim)
    w2 = jax.random.uniform(k3, (emb_dim, d), jnp.float32, -bound2, bound2)
    b2 = jax.random.uniform(k4, (1, d), jnp.float32, -bound2, bound2)
    # BatchNorm1d defaults: weight (gamma) = 1, bias (beta) = 0
    gamma = jnp.ones((1, emb_dim), jnp.float32)
    beta = jnp.zeros((1, emb_dim), jnp.float32)
    return w1, b1, gamma, beta, w2, b2


def reference_forward(x, w1, b1, gamma, beta, w2, b2):
    # Faithful reference including b1 (the kernel exploits its exact cancellation).
    h = x @ w1 + b1
    mean = h.mean(axis=0, keepdims=True)
    var = ((h - mean) ** 2).mean(axis=0, keepdims=True)
    h_bn = (h - mean) / jnp.sqrt(var + EPS) * gamma + beta
    return h_bn @ w2 + b2


if __name__ == "__main__":
    B, d, emb_dim = 8, 64, 32

    key = jax.random.PRNGKey(0)
    kx, kp = jax.random.split(key)
    # forward() flattens x.view(B, -1); here x is already 2-D (B, d).
    x = jax.random.normal(kx, (B, d), jnp.float32)
    params = init_params(kp, d, emb_dim)

    ref = reference_forward(x, *params)

    # f32 path (bit-for-bit faithful to the module's default dtype)
    out = autoencoder_bn_forward(x, *params)
    out = jax.block_until_ready(out)
    assert out.shape == (B, d)
    assert jnp.allclose(out, ref, atol=1e-4, rtol=1e-4), "f32 mismatch vs reference"

    # bf16 weight/activation streaming path (halves HBM bytes; f32 accumulation)
    out_bf = autoencoder_bn_forward(x, *params, stream_dtype=jnp.bfloat16)
    out_bf = jax.block_until_ready(out_bf)
    assert out_bf.shape == (B, d)
    assert jnp.allclose(out_bf, ref, atol=1e-1, rtol=1e-1), "bf16 mismatch vs reference"

    print("KERNEL_OK")
</pallas_src>

<mosaic_0001>
module attributes {stable_mosaic.version = 11 : i64} {
  func.func @_encoder_bn_kernel(%arg0: i32, %arg1: memref<8x128xf32, #tpu.memory_space<vmem>>, %arg2: memref<128x128xf32, #tpu.memory_space<vmem>>, %arg3: memref<1x128xf32, #tpu.memory_space<vmem>>, %arg4: memref<1x128xf32, #tpu.memory_space<vmem>>, %arg5: memref<8x128xf32, #tpu.memory_space<vmem>>, %arg6: memref<8x128xf32, #tpu.memory_space<vmem>>) attributes {dimension_semantics = [#tpu.dimension_semantics<arbitrary>], iteration_bounds = array<i64: 1>, scalar_prefetch = 0 : i64, scratch_operands = 1 : i64, tpu.core_type = #tpu.core_type<tc>, window_params = [{transform_indices = @transform_0, window_bounds = array<i64: 8, 128>}, {transform_indices = @transform_1, window_bounds = array<i64: 128, 128>}, {pipeline_mode = #tpu.pipeline_mode<synchronous>, transform_indices = @transform_2, window_bounds = array<i64: 1, 128>}, {pipeline_mode = #tpu.pipeline_mode<synchronous>, transform_indices = @transform_3, window_bounds = array<i64: 1, 128>}, {pipeline_mode = #tpu.pipeline_mode<synchronous>, transform_indices = @transform_4, window_bounds = array<i64: 8, 128>}]} {
    %c0_i32 = arith.constant 0 : i32
    %0 = arith.cmpi eq, %arg0, %c0_i32 : i32
    %1 = arith.extui %0 : i1 to i32
    %c0_i32_0 = arith.constant 0 : i32
    %2 = arith.cmpi ne, %1, %c0_i32_0 : i32
    scf.if %2 {
      %cst_10 = arith.constant 0.000000e+00 : f32
      %12 = vector.broadcast %cst_10 : f32 to vector<8x128xf32>
      %c0_11 = arith.constant 0 : index
      %c0_12 = arith.constant 0 : index
      %13 = vector.load %arg6[%c0_11, %c0_12] : memref<8x128xf32, #tpu.memory_space<vmem>>, vector<8x128xf32>
      tpu.vector_store %arg6[%c0_11, %c0_12], %12 {strides = array<i32>} : memref<8x128xf32, #tpu.memory_space<vmem>>, vector<8x128xf32>,
    } else {
    }
    %c0 = arith.constant 0 : index
    %c0_1 = arith.constant 0 : index
    %3 = vector.load %arg6[%c0, %c0_1] : memref<8x128xf32, #tpu.memory_space<vmem>>, vector<8x128xf32>
    %c0_2 = arith.constant 0 : index
    %c0_3 = arith.constant 0 : index
    %4 = vector.load %arg1[%c0_2, %c0_3] : memref<8x128xf32, #tpu.memory_space<vmem>>, vector<8x128xf32>
    %c0_4 = arith.constant 0 : index
    %c0_5 = arith.constant 0 : index
    %5 = vector.load %arg2[%c0_4, %c0_5] : memref<128x128xf32, #tpu.memory_space<vmem>>, vector<128x128xf32>
    %cst = arith.constant dense<0.000000e+00> : vector<8x128xf32>
    %6 = tpu.matmul %4, %5, %cst {dimension_numbers = #tpu.dot_dimension_numbers<[1], [0], [0], [1], [0, 0, 1, 1], [], []>} : vector<8x128xf32>, vector<128x128xf32>, vector<8x128xf32> -> vector<8x128xf32>
    %7 = arith.addf %3, %6 : vector<8x128xf32>
    %c0_6 = arith.constant 0 : index
    %c0_7 = arith.constant 0 : index
    %8 = vector.load %arg6[%c0_6, %c0_7] : memref<8x128xf32, #tpu.memory_space<vmem>>, vector<8x128xf32>
    tpu.vector_store %arg6[%c0_6, %c0_7], %7 {strides = array<i32>} : memref<8x128xf32, #tpu.memory_space<vmem>>, vector<8x128xf32>,
    %c0_i32_8 = arith.constant 0 : i32
    %9 = arith.cmpi eq, %arg0, %c0_i32_8 : i32
    %10 = arith.extui %9 : i1 to i32
    %c0_i32_9 = arith.constant 0 : i32
    %11 = arith.cmpi ne, %10, %c0_i32_9 : i32
    scf.if %11 {
      %c0_10 = arith.constant 0 : index
      %c0_11 = arith.constant 0 : index
      %12 = vector.load %arg6[%c0_10, %c0_11] : memref<8x128xf32, #tpu.memory_space<vmem>>, vector<8x128xf32>
      %cst_12 = arith.constant dense<0.000000e+00> : vector<128xf32>
      %13 = vector.multi_reduction <add>, %12, %cst_12 [0] : vector<8x128xf32> to vector<128xf32>
      %14 = vector.shape_cast %13 : vector<128xf32> to vector<1x128xf32>
      %cst_13 = arith.constant 8.000000e+00 : f32
      %15 = vector.broadcast %cst_13 : f32 to vector<1x128xf32>
      %16 = arith.divf %14, %15 : vector<1x128xf32>
      %17 = vector.broadcast %16 : vector<1x128xf32> to vector<8x128xf32>
      %18 = arith.subf %12, %17 : vector<8x128xf32>
      %19 = arith.mulf %18, %18 : vector<8x128xf32>
      %cst_14 = arith.constant dense<0.000000e+00> : vector<128xf32>
      %20 = vector.multi_reduction <add>, %19, %cst_14 [0] : vector<8x128xf32> to vector<128xf32>
      %21 = vector.shape_cast %20 : vector<128xf32> to vector<1x128xf32>
      %cst_15 = arith.constant 8.000000e+00 : f32
      %22 = vector.broadcast %cst_15 : f32 to vector<1x128xf32>
      %23 = arith.divf %21, %22 : vector<1x128xf32>
      %c0_16 = arith.constant 0 : index
      %c0_17 = arith.constant 0 : index
      %24 = vector.load %arg3[%c0_16, %c0_17] : memref<1x128xf32, #tpu.memory_space<vmem>>, vector<1x128xf32>
      %cst_18 = arith.constant 9.99999974E-6 : f32
      %25 = vector.broadcast %cst_18 : f32 to vector<1x128xf32>
      %26 = arith.addf %23, %25 : vector<1x128xf32>
      %27 = math.rsqrt %26 : vector<1x128xf32>
      %28 = arith.mulf %24, %27 : vector<1x128xf32>
      %c0_19 = arith.constant 0 : index
      %c0_20 = arith.constant 0 : index
      %29 = vector.load %arg4[%c0_19, %c0_20] : memref<1x128xf32, #tpu.memory_space<vmem>>, vector<1x128xf32>
      %30 = arith.mulf %16, %28 : vector<1x128xf32>
      %31 = arith.subf %29, %30 : vector<1x128xf32>
      %32 = vector.broadcast %28 : vector<1x128xf32> to vector<8x128xf32>
      %33 = arith.mulf %12, %32 : vector<8x128xf32>
      %34 = vector.broadcast %31 : vector<1x128xf32> to vector<8x128xf32>
      %35 = arith.addf %33, %34 : vector<8x128xf32>
      %c0_21 = arith.constant 0 : index
      %c0_22 = arith.constant 0 : index
      %36 = vector.load %arg5[%c0_21, %c0_22] : memref<8x128xf32, #tpu.memory_space<vmem>>, vector<8x128xf32>
      tpu.vector_store %arg5[%c0_21, %c0_22], %35 {strides = array<i32>} : memref<8x128xf32, #tpu.memory_space<vmem>>, vector<8x128xf32>,
    } else {
    }
    return
  }
  func.func @transform_0(%arg0: i32) -> (i32, i32) {
    %c0_i32 = arith.constant 0 : i32
    %c0_i32_0 = arith.constant 0 : i32
    return %c0_i32, %arg0 : i32, i32
  }
  func.func @transform_1(%arg0: i32) -> (i32, i32) {
    %c0_i32 = arith.constant 0 : i32
    %c0_i32_0 = arith.constant 0 : i32
    return %arg0, %c0_i32 : i32, i32
  }
  func.func @transform_2(%arg0: i32) -> (i32, i32) {
    %c0_i32 = arith.constant 0 : i32
    %c0_i32_0 = arith.constant 0 : i32
    %c0_i32_1 = arith.constant 0 : i32
    return %c0_i32, %c0_i32_0 : i32, i32
  }
  func.func @transform_3(%arg0: i32) -> (i32, i32) {
    %c0_i32 = arith.constant 0 : i32
    %c0_i32_0 = arith.constant 0 : i32
    %c0_i32_1 = arith.constant 0 : i32
    return %c0_i32, %c0_i32_0 : i32, i32
  }
  func.func @transform_4(%arg0: i32) -> (i32, i32) {
    %c0_i32 = arith.constant 0 : i32
    %c0_i32_0 = arith.constant 0 : i32
    %c0_i32_1 = arith.constant 0 : i32
    return %c0_i32, %c0_i32_0 : i32, i32
  }
}

</mosaic_0001>

<bundles_post_ra>
// kernel: tpu_custom_call.1
= control target key start
LH: loop header
LB: loop body
LE: loop exit
PB: predicated region body
PF: predicated region fallthrough
CT: control target
= control target key end

     0   :  { %9 = vsyncpa [#allocation4], 0  ;;  %s438_s0 = inlined_call_operand.hbm [shape: f32[8,128], index: 0, kind: input, shape index: {}]   ;;  %s439_s1 = inlined_call_operand.hbm [shape: f32[128,128], index: 1, kind: input, shape index: {}]   ;;  %s440_s2 = inlined_call_operand.vmem [shape: f32[1,128], index: 2, kind: input, shape index: {}]   ;;  %s441_s3 = inlined_call_operand.vmem [shape: f32[1,128], index: 3, kind: input, shape index: {}]   ;;  %s442_s4 = inlined_call_operand.hbm [shape: f32[8,128], index: 4, kind: output, shape index: {}]  }
   0x1   :  { %10 = vsyncpa [#allocation7], 0 }
   0x2   :  { %11 = vsyncpa [#allocation5], 0  ;;  %s356_s15 = smov [#allocation3]   ;;  %s357_s17 = smov [#allocation6]  }
   0x3   :  { %s18_s16 = sshll.u32 %s356_s15, 4  ;;  %s27_s18 = sshll.u32 %s357_s17, 4  ;;  %s19_s16 = int_to_ptr.vmem [resolvable:$true] %s18_s16  ;;  %s389_s18 = int_to_ptr.vmem [resolvable:$true] %s27_s18 }
   0x4   :  { %s284_s21 = scalar_lea.hbm %s438_s0, 128 }
   0x5   :  { %p285_p0 = scmp.ne.s32.totalorder %s438_s0, %s284_s21  ;;  %p288_p1 = scmp.lt.u32.totalorder %s284_s21, %s438_s0 }
   0x7   :  { %p290_p2 = pnand %p288_p1, %p285_p0 }
   0x9   :  { %293 = shalt.err (!%p290_p2)
}
   0xa   :  { %s294_s26 = scalar_lea.vmem %s19_s16, 128  ;;  %p299_p4 = scmp.lt.s32.totalorder %s19_s16, %s19_s16 }
   0xb   :  { %p295_p3 = scmp.ne.s32.totalorder %s19_s16, %s294_s26  ;;  %p300_p5 = scmp.lt.s32.totalorder %s294_s26, %s294_s26 }
   0xd   :  { %p301_p6 = por %p300_p5, %p299_p4 }
   0xf   :  { %p302_p7 = pnand %p301_p6, %p295_p3 }
  0x11   :  { %305 = shalt.err (!%p302_p7)
}
  0x12   :  { %21 = dma.hbm_to_vmem [thread:$0]  %s438_s0, 128, %s19_s16, [#allocation4]  }
  0x13   :  { %s306_s5 = scalar_lea.hbm %s439_s1, 2048 }
  0x14   :  { %p307_p8 = scmp.ne.s32.totalorder %s439_s1, %s306_s5  ;;  %p310_p9 = scmp.lt.u32.totalorder %s306_s5, %s439_s1 }
  0x16   :  { %p312_p10 = pnand %p310_p9, %p307_p8 }
  0x18   :  { %315 = shalt.err (!%p312_p10)
}
  0x19   :  { %s316_s10 = scalar_lea.vmem %s389_s18, 2048  ;;  %p321_p12 = scmp.lt.s32.totalorder %s389_s18, %s389_s18 }
  0x1a   :  { %p317_p11 = scmp.ne.s32.totalorder %s389_s18, %s316_s10  ;;  %p322_p13 = scmp.lt.s32.totalorder %s316_s10, %s316_s10 }
  0x1c   :  { %p323_p0 = por %p322_p13, %p321_p12 }
  0x1e   :  { %p324_p1 = pnand %p323_p0, %p317_p11 }
  0x20   :  { %327 = shalt.err (!%p324_p1)
}
  0x21   :  { %s358_s0 = smov 128   ;;  %s359_s11 = smov 8  }
  0x22   :  { %33 = dma.hbm_to_vmem [thread:$0]  %s439_s1, 2048, %s389_s18, [#allocation7], %s358_s0, %s358_s0, %s359_s11  }
  0x23   :  { %350 = dma.done.wait [#allocation4], 128  }
  0x24   :  { %351 = vsyncadd [#allocation4], 4294967168 }
  0x25   :  { %352 = dma.done.wait [#allocation7], 2048  }
  0x26   :  { %353 = vsyncadd [#allocation7], 4294965248  ;;  %v360_v0 = vmov 0.0|0.0   ;;  %vm361_vm0 = vmmov 0   ;;  %v362_v1 = vmov 0.0   ;;  %v51_v2 = vld [vmem:[#allocation6] sm:$0xff]  ;;  %v168_v46 = vlaneseq }
  0x27   :  { %250 = vmatprep.subr.bf16.mxu0 %v360_v0  ;;  %247 = vmatprep.mubr.msk.f32.mxu0 %vm361_vm0, %v362_v1  ;;  %v52_v3 = vld [vmem:[#allocation6 + $0x8] sm:$0xff]  ;;  %v53_v4 = vld [vmem:[#allocation6 + $0x10] sm:$0xff]  ;;  %v54_v6 = vld [vmem:[#allocation6 + $0x18] sm:$0xff]  ;;  %s363_s17 = smov [#allocation8]  }
  0x28   :  { %v251_v5 = vpack.c.bf16 %v52_v3, %v51_v2  ;;  %v254_v7 = vpack.c.bf16 %v54_v6, %v53_v4  ;;  %v55_v8 = vld [vmem:[#allocation6 + $0x20] sm:$0xff]  ;;  %v56_v9 = vld [vmem:[#allocation6 + $0x28] sm:$0xff]  ;;  %v57_v11 = vld [vmem:[#allocation6 + $0x30] sm:$0xff]  ;;  %v169_v47 = vshrl.u32 %v168_v46, 7  ;;  %s188_s18 = sshll.u32 %s363_s17, 4  ;;  %s189_s18 = int_to_ptr.vmem [resolvable:$true] %s188_s18 }
  0x29   :  { %v257_v10 = vpack.c.bf16 %v56_v9, %v55_v8  ;;  %v58_v12 = vld [vmem:[#allocation6 + $0x38] sm:$0xff]  ;;  %v59_v14 = vld [vmem:[#allocation6 + $0x40] sm:$0xff]  ;;  %v60_v15 = vld [vmem:[#allocation6 + $0x48] sm:$0xff]  ;;  %s328_s19 = scalar_lea.vmem %s189_s18, 128  ;;  %p333_p3 = scmp.lt.s32.totalorder %s189_s18, %s189_s18 }
  0x2a   :  { %252 = vmatpush3.bf16.msra.mxu0 %v251_v5  ;;  %v260_v13 = vpack.c.bf16 %v58_v12, %v57_v11  ;;  %v263_v16 = vpack.c.bf16 %v60_v15, %v59_v14  ;;  %v61_v17 = vld [vmem:[#allocation6 + $0x50] sm:$0xff]  ;;  %v62_v18 = vld [vmem:[#allocation6 + $0x58] sm:$0xff]  ;;  %v63_v20 = vld [vmem:[#allocation6 + $0x60] sm:$0xff]  ;;  %v170_v49 = vsub.s32 0, %v169_v47  ;;  %p329_p2 = scmp.ne.s32.totalorder %s189_s18, %s328_s19  ;;  %p334_p4 = scmp.lt.s32.totalorder %s328_s19, %s328_s19 }
  0x2b   :  { %253 = vmatprep.subr.bf16.mxu0 %v360_v0  ;;  %v266_v19 = vpack.c.bf16 %v62_v18, %v61_v17  ;;  %v64_v21 = vld [vmem:[#allocation6 + $0x68] sm:$0xff]  ;;  %v65_v23 = vld [vmem:[#allocation6 + $0x70] sm:$0xff]  ;;  %v66_v24 = vld [vmem:[#allocation6 + $0x78] sm:$0xff] }
  0x2c   :  { %v269_v22 = vpack.c.bf16 %v64_v21, %v63_v20  ;;  %v272_v25 = vpack.c.bf16 %v66_v24, %v65_v23  ;;  %v50_v26 = vld [vmem:[#allocation3] sm:$0xff]  ;;  %p335_p5 = por %p334_p4, %p333_p3 }
  0x2d   :  { %v160_v48 = vld [vmem:[%s440_s2] sm:$0x1] }
  0x2e   :  { %255 = vmatpush3.bf16.msra.mxu0 %v254_v7  ;;  %v164_v52 = vld [vmem:[%s441_s3] sm:$0x1]  ;;  %p336_p6 = pnand %p335_p5, %p329_p2 }
  0x2f   :  { %256 = vmatprep.subr.bf16.mxu0 %v360_v0 }
  0x32   :  { %258 = vmatpush3.bf16.msra.mxu0 %v257_v10 }
  0x33   :  { %259 = vmatprep.subr.bf16.mxu0 %v360_v0 }
  0x36   :  { %261 = vmatpush3.bf16.msra.mxu0 %v260_v13 }
  0x37   :  { %262 = vmatprep.subr.bf16.mxu0 %v360_v0 }
  0x3a   :  { %264 = vmatpush3.bf16.msra.mxu0 %v263_v16 }
  0x3b   :  { %265 = vmatprep.subr.bf16.mxu0 %v360_v0 }
  0x3e   :  { %267 = vmatpush3.bf16.msra.mxu0 %v266_v19 }
  0x3f   :  { %268 = vmatprep.subr.bf16.mxu0 %v360_v0 }
  0x42   :  { %270 = vmatpush3.bf16.msra.mxu0 %v269_v22 }
  0x43   :  { %271 = vmatprep.subr.bf16.mxu0 %v360_v0 }
  0x46   :  { %273 = vmatpush3.bf16.msra.mxu0 %v272_v25 }
  0x49   :  { %248 = vmatmul.mubr.f32.vlgmr.msra.gmra.mrb[0].mxu0 %v50_v26 }
 0x11c   :  { %v133_v27 = vpop.f32.mrb[0].mxu0 }
 0x11d   :  { %v143_v28 = vrot.slane %v133_v27, 4  ;;  %v249_v29 = vpop.f32.mrb[1].mxu0 }
 0x11f   :  { %v144_v30 = vadd.f32 %v143_v28, %v133_v27 }
 0x121   :  { %v145_v31 = vrot.slane %v144_v30, 2 }
 0x123   :  { %v146_v32 = vadd.f32 %v145_v31, %v144_v30 }
 0x125   :  { %v147_v33 = vrot.slane %v146_v32, 1 }
 0x127   :  { %v148_v34 = vadd.f32 %v147_v33, %v146_v32 }
 0x129   :  { %v150_v35 = vmul.f32 0.125, %v148_v34 }
 0x12b   :  { %v151_v36 = vsub.f32 %v133_v27, %v150_v35 }
 0x12d   :  { %v152_v37 = vmul.f32 %v151_v36, %v151_v36 }
 0x12f   :  { %v153_v38 = vrot.slane %v152_v37, 4 }
 0x131   :  { %v154_v39 = vadd.f32 %v153_v38, %v152_v37 }
 0x133   :  { %v155_v40 = vrot.slane %v154_v39, 2 }
 0x135   :  { %v156_v41 = vadd.f32 %v155_v40, %v154_v39 }
 0x137   :  { %v157_v42 = vrot.slane %v156_v41, 1 }
 0x139   :  { %v158_v43 = vadd.f32 %v157_v42, %v156_v41 }
 0x13b   :  { %v159_v44 = vmul.f32 0.125, %v158_v43 }
 0x13d   :  { %v161_v45 = vadd.f32 1e-05, %v159_v44 }
 0x13f   :  { %282 = vrsqrt.f32 %v161_v45 }
 0x149   :  { %v283_v50 = vpop.eup %282 }
 0x14a   :  { %v163_v51 = vmul.f32 %v283_v50, %v160_v48 }
 0x14c   :  { %v165_v53 = vmul.f32 %v163_v51, %v150_v35  ;;  %v171_v54 = vrot.slane %v163_v51, %v170_v49 }
 0x14e   :  { %v166_v55 = vsub.f32 %v164_v52, %v165_v53  ;;  %v173_v56 = vmul.f32 %v171_v54, %v133_v27 }
 0x150   :  { %v178_v57 = vrot.slane %v166_v55, %v170_v49 }
 0x152   :  { %v180_v58 = vadd.f32 %v178_v57, %v173_v56 }
 0x154   :  { %181 = vst [vmem:[#allocation8] sm:$0xff] %v180_v58 }
 0x155   :  { %339 = shalt.err (!%p336_p6)
}
 0x156   :  { %s340_s3 = scalar_lea.hbm %s442_s4, 128 }
 0x157   :  { %p341_p7 = scmp.ne.s32.totalorder %s442_s4, %s340_s3  ;;  %p344_p8 = scmp.lt.u32.totalorder %s340_s3, %s442_s4 }
 0x159   :  { %p346_p9 = pnand %p344_p8, %p341_p7 }
 0x15b   :  { %349 = shalt.err (!%p346_p9)
}
 0x15c   :  { %191 = dma.vmem_to_hbm [thread:$0]  %s189_s18, 128, %s442_s4, [#allocation5]  }
 0x15d   :  { %354 = dma.done.wait [#allocation5], 128  }
 0x15e   :  { %355 = vsyncadd [#allocation5], 4294967168 }
 0x15f   :  { %195 = vsyncpa [#allocation4], 1 }
 0x160   :  { %196 = vsyncpa [#allocation7], 1 }
 0x161   :  { %197 = vsyncpa [#allocation5], 1 }

</bundles_post_ra>
